<compile_context>
chip_gen: v5e
topology: v5e:2x2
jax: 0.10.0
libtpu: 0.0.40
codegen_flags: <defaults>
</compile_context>

<pallas_src>
import jax
import jax.numpy as jnp
import numpy as np
from jax.experimental import pallas as pl
from jax.experimental.pallas import tpu as pltpu

# ----- problem sizes (small, consistent with the module's forward) -----
B, C, H, W = 2, 4, 16, 16          # batch, channels, spatial
HID = 32                           # hidden width of synthetic score model
N_STEPS = 10                       # sde.N
SIGMA_MIN, SIGMA_MAX = 0.01, 1.0   # VE-SDE sigma schedule endpoints
NUM_CLASSES = 10
HW = H * W                         # lane dim of the channel-major view
BC = B * C                         # sublane dim of the channel-major view


def _diffusion_loss_kernel(x_ref, z_ref, sig_ref, isig_ref, cond_ref,
                           w1t_ref, w2t_ref, b2_ref, loss_ref):
    """Whole diffusion training loss in one gridless invocation.

    x_ref    : (B*C, H*W)  VMEM  clean pixels, channel-major (free reshape of NCHW)
    z_ref    : (B*C, H*W)  VMEM  unit gaussian noise
    sig_ref  : (B*C, 1)    VMEM  per-row sigma   (sigma[b] repeated over channels)
    isig_ref : (B*C, 1)    VMEM  per-row 1/sigma
    cond_ref : (HID, B)    VMEM  per-batch conditioning columns
                                  = (b1 + log(sigma)*tw + yemb[label])^T
    w1t_ref  : (HID, C)    VMEM  score-model weights, pre-transposed
    w2t_ref  : (C, HID)    VMEM
    b2_ref   : (C, 1)      VMEM
    loss_ref : (1, 1)      SMEM  scalar output (mean squared error)
    """
    z = z_ref[...]
    # Whole-slab (8, 256) elementwise work: fully lane-dense, one VPU pass each.
    x_t = x_ref[...] + z * sig_ref[...]          # x_0 + sigma * z
    zs = z * isig_ref[...]                       # z / sigma  (== -target)

    w1t = w1t_ref[...]                           # (HID, C)
    w2t = w2t_ref[...]                           # (C, HID)
    b2 = b2_ref[...]                             # (C, 1)

    sq_acc = None
    # B is tiny and static: unroll; each batch is a contiguous (C, HW) row block.
    for b in range(B):
        x_t_b = x_t[b * C:(b + 1) * C, :]                          # (C, HW)
        # Transposed-form 1x1-conv MLP: both MXU outputs are 256 lanes wide.
        h = jnp.tanh(
            jnp.dot(w1t, x_t_b, preferred_element_type=jnp.float32)
            + cond_ref[:, b:b + 1]                                 # (HID,1) lane-broadcast
        )                                                          # (HID, HW)
        score = jnp.dot(w2t, h, preferred_element_type=jnp.float32) + b2   # (C, HW)
        # diff = score - target = score + z/sigma
        diff = score + zs[b * C:(b + 1) * C, :]
        contrib = diff * diff
        sq_acc = contrib if sq_acc is None else sq_acc + contrib
    # Single cross-lane reduce for the whole problem.
    loss_ref[0, 0] = jnp.sum(sq_acc) * jnp.float32(1.0 / (B * C * H * W))


@jax.jit
def diffusion_forward_loss(x0_nchw, label, z_nchw, sigma_b, params):
    """NCHW -> (B*C, H*W) free reshape, tiny pre-transposed side tables, one pallas_call."""
    w1, b1, tw, w2, b2, yemb_table = params

    # (B, C, H, W) -> (B*C, H*W): a no-copy reshape of NCHW (no transposes).
    x = x0_nchw.reshape(BC, HW).astype(jnp.float32)
    z = z_nchw.reshape(BC, HW).astype(jnp.float32)

    sig = sigma_b.astype(jnp.float32)                 # (B,)
    sig_col = jnp.repeat(sig, C)[:, None]             # (B*C, 1)
    isig_col = jnp.repeat(1.0 / sig, C)[:, None]      # (B*C, 1), precomputed reciprocal

    # Per-batch conditioning as columns: (HID, B)
    cond = (b1 + jnp.log(sig)[:, None] * tw
            + yemb_table[label]).astype(jnp.float32).T

    # Pre-transposed weights so the kernel needs no in-kernel transposes.
    w1t = w1.T.astype(jnp.float32)                    # (HID, C)
    w2t = w2.T.astype(jnp.float32)                    # (C, HID)
    b2c = b2.T.astype(jnp.float32)                    # (C, 1)

    loss = pl.pallas_call(
        _diffusion_loss_kernel,
        out_shape=jax.ShapeDtypeStruct((1, 1), jnp.float32),
        in_specs=[
            pl.BlockSpec(memory_space=pltpu.MemorySpace.VMEM),   # x      (B*C, HW)
            pl.BlockSpec(memory_space=pltpu.MemorySpace.VMEM),   # z      (B*C, HW)
            pl.BlockSpec(memory_space=pltpu.MemorySpace.VMEM),   # sigma  (B*C, 1)
            pl.BlockSpec(memory_space=pltpu.MemorySpace.VMEM),   # 1/sig  (B*C, 1)
            pl.BlockSpec(memory_space=pltpu.MemorySpace.VMEM),   # cond   (HID, B)
            pl.BlockSpec(memory_space=pltpu.MemorySpace.VMEM),   # w1^T   (HID, C)
            pl.BlockSpec(memory_space=pltpu.MemorySpace.VMEM),   # w2^T   (C, HID)
            pl.BlockSpec(memory_space=pltpu.MemorySpace.VMEM),   # b2     (C, 1)
        ],
        out_specs=pl.BlockSpec(memory_space=pltpu.MemorySpace.SMEM),
    )(x, z, sig_col, isig_col, cond, w1t, w2t, b2c)
    return loss[0, 0]


def reference_loss(x0_nchw, label, z_nchw, sigma_b, params):
    """Pure-JAX reference of the same forward pass (NCHW semantics)."""
    w1, b1, tw, w2, b2, yemb_table = params
    sigma4 = sigma_b[:, None, None, None]
    noise = z_nchw * sigma4
    x_t = x0_nchw + noise
    xt_nhwc = jnp.transpose(x_t, (0, 2, 3, 1))
    h = jnp.tanh(jnp.einsum('bhwc,cd->bhwd', xt_nhwc, w1)
                 + b1[0]
                 + jnp.log(sigma_b)[:, None, None, None] * tw[0]
                 + yemb_table[label][:, None, None, :])
    score_nhwc = jnp.einsum('bhwd,dc->bhwc', h, w2) + b2[0]
    score = jnp.transpose(score_nhwc, (0, 3, 1, 2))
    target = -noise / (sigma4 ** 2)
    return jnp.mean((score - target) ** 2)


if __name__ == "__main__":
    key = jax.random.PRNGKey(0)
    k = jax.random.split(key, 10)

    # inputs to forward(x_0, label)
    x0 = jax.random.normal(k[0], (B, C, H, W), jnp.float32)
    label = jax.random.randint(k[1], (B,), 0, NUM_CLASSES)

    # randomness drawn inside forward(): timestep and gaussian noise
    timestep = jax.random.randint(k[2], (B,), 0, N_STEPS)    # torch.randint(0, N, (batch,))
    z = jax.random.normal(k[3], (B, C, H, W), jnp.float32)   # torch.randn_like(x_0)

    # smld_sigma = flip(sde.sigmas); VE-SDE geometric schedule
    idx = jnp.arange(N_STEPS, dtype=jnp.float32)
    sigmas = SIGMA_MIN * (SIGMA_MAX / SIGMA_MIN) ** (idx / (N_STEPS - 1))
    smld_sigma = jnp.flip(sigmas)
    sigma_b = smld_sigma[timestep]                           # (B,)

    # deterministic synthetic score-model parameters
    w1 = 0.2 * jax.random.normal(k[4], (C, HID), jnp.float32)
    b1 = 0.1 * jax.random.normal(k[5], (1, HID), jnp.float32)
    tw = 0.1 * jax.random.normal(k[6], (1, HID), jnp.float32)
    w2 = 0.2 * jax.random.normal(k[7], (HID, C), jnp.float32)
    b2 = 0.1 * jax.random.normal(k[8], (1, C), jnp.float32)
    yemb_table = 0.1 * jax.random.normal(k[9], (NUM_CLASSES, HID), jnp.float32)
    params = (w1, b1, tw, w2, b2, yemb_table)

    loss = diffusion_forward_loss(x0, label, z, sigma_b, params)
    loss = jax.block_until_ready(loss)

    ref = reference_loss(x0, label, z, sigma_b, params)
    # Tolerance covers default (non-HIGHEST) MXU matmul precision differences
    # between the Pallas kernel and the XLA reference einsums.
    assert np.allclose(np.asarray(loss), np.asarray(ref), rtol=5e-3, atol=1e-3), (
        float(loss), float(ref))
    print("KERNEL_OK")
</pallas_src>

<mosaic_0001>
module attributes {stable_mosaic.version = 11 : i64} {
  func.func @_diffusion_loss_kernel(%arg0: memref<8x256xf32, #tpu.memory_space<vmem>>, %arg1: memref<8x256xf32, #tpu.memory_space<vmem>>, %arg2: memref<8x1xf32, #tpu.memory_space<vmem>>, %arg3: memref<8x1xf32, #tpu.memory_space<vmem>>, %arg4: memref<32x2xf32, #tpu.memory_space<vmem>>, %arg5: memref<32x4xf32, #tpu.memory_space<vmem>>, %arg6: memref<4x32xf32, #tpu.memory_space<vmem>>, %arg7: memref<4x1xf32, #tpu.memory_space<vmem>>, %arg8: memref<1x1xf32, #tpu.memory_space<smem>>) attributes {dimension_semantics = [], scalar_prefetch = 0 : i64, scratch_operands = 0 : i64, tpu.core_type = #tpu.core_type<tc>} {
    %c0 = arith.constant 0 : index
    %c0_0 = arith.constant 0 : index
    %0 = vector.load %arg1[%c0, %c0_0] : memref<8x256xf32, #tpu.memory_space<vmem>>, vector<8x256xf32>
    %c0_1 = arith.constant 0 : index
    %c0_2 = arith.constant 0 : index
    %1 = vector.load %arg0[%c0_1, %c0_2] : memref<8x256xf32, #tpu.memory_space<vmem>>, vector<8x256xf32>
    %c0_3 = arith.constant 0 : index
    %c0_4 = arith.constant 0 : index
    %2 = vector.load %arg2[%c0_3, %c0_4] : memref<8x1xf32, #tpu.memory_space<vmem>>, vector<8x1xf32>
    %3 = vector.broadcast %2 : vector<8x1xf32> to vector<8x256xf32>
    %4 = arith.mulf %0, %3 : vector<8x256xf32>
    %5 = arith.addf %1, %4 : vector<8x256xf32>
    %c0_5 = arith.constant 0 : index
    %c0_6 = arith.constant 0 : index
    %6 = vector.load %arg3[%c0_5, %c0_6] : memref<8x1xf32, #tpu.memory_space<vmem>>, vector<8x1xf32>
    %7 = vector.broadcast %6 : vector<8x1xf32> to vector<8x256xf32>
    %8 = arith.mulf %0, %7 : vector<8x256xf32>
    %c0_7 = arith.constant 0 : index
    %c0_8 = arith.constant 0 : index
    %9 = vector.load %arg5[%c0_7, %c0_8] : memref<32x4xf32, #tpu.memory_space<vmem>>, vector<32x4xf32>
    %c0_9 = arith.constant 0 : index
    %c0_10 = arith.constant 0 : index
    %10 = vector.load %arg6[%c0_9, %c0_10] : memref<4x32xf32, #tpu.memory_space<vmem>>, vector<4x32xf32>
    %c0_11 = arith.constant 0 : index
    %c0_12 = arith.constant 0 : index
    %11 = vector.load %arg7[%c0_11, %c0_12] : memref<4x1xf32, #tpu.memory_space<vmem>>, vector<4x1xf32>
    %12 = vector.extract_strided_slice %5 {offsets = [0, 0], sizes = [4, 256], strides = [1, 1]} : vector<8x256xf32> to vector<4x256xf32>
    %cst = arith.constant dense<0.000000e+00> : vector<32x256xf32>
    %13 = tpu.matmul %9, %12, %cst {dimension_numbers = #tpu.dot_dimension_numbers<[1], [0], [0], [1], [0, 0, 1, 1], [], []>} : vector<32x4xf32>, vector<4x256xf32>, vector<32x256xf32> -> vector<32x256xf32>
    %c0_13 = arith.constant 0 : index
    %c0_14 = arith.constant 0 : index
    %14 = vector.load %arg4[%c0_13, %c0_14] : memref<32x2xf32, #tpu.memory_space<vmem>>, vector<32x1xf32>
    %15 = vector.broadcast %14 : vector<32x1xf32> to vector<32x256xf32>
    %16 = arith.addf %13, %15 : vector<32x256xf32>
    %17 = math.tanh %16 : vector<32x256xf32>
    %cst_15 = arith.constant dense<0.000000e+00> : vector<4x256xf32>
    %18 = tpu.matmul %10, %17, %cst_15 {dimension_numbers = #tpu.dot_dimension_numbers<[1], [0], [0], [1], [0, 0, 1, 1], [], []>} : vector<4x32xf32>, vector<32x256xf32>, vector<4x256xf32> -> vector<4x256xf32>
    %19 = vector.broadcast %11 : vector<4x1xf32> to vector<4x256xf32>
    %20 = arith.addf %18, %19 : vector<4x256xf32>
    %21 = vector.extract_strided_slice %8 {offsets = [0, 0], sizes = [4, 256], strides = [1, 1]} : vector<8x256xf32> to vector<4x256xf32>
    %22 = arith.addf %20, %21 : vector<4x256xf32>
    %23 = arith.mulf %22, %22 : vector<4x256xf32>
    %24 = vector.extract_strided_slice %5 {offsets = [4, 0], sizes = [4, 256], strides = [1, 1]} : vector<8x256xf32> to vector<4x256xf32>
    %cst_16 = arith.constant dense<0.000000e+00> : vector<32x256xf32>
    %25 = tpu.matmul %9, %24, %cst_16 {dimension_numbers = #tpu.dot_dimension_numbers<[1], [0], [0], [1], [0, 0, 1, 1], [], []>} : vector<32x4xf32>, vector<4x256xf32>, vector<32x256xf32> -> vector<32x256xf32>
    %c0_17 = arith.constant 0 : index
    %c1 = arith.constant 1 : index
    %26 = vector.load %arg4[%c0_17, %c1] : memref<32x2xf32, #tpu.memory_space<vmem>>, vector<32x1xf32>
    %27 = vector.broadcast %26 : vector<32x1xf32> to vector<32x256xf32>
    %28 = arith.addf %25, %27 : vector<32x256xf32>
    %29 = math.tanh %28 : vector<32x256xf32>
    %cst_18 = arith.constant dense<0.000000e+00> : vector<4x256xf32>
    %30 = tpu.matmul %10, %29, %cst_18 {dimension_numbers = #tpu.dot_dimension_numbers<[1], [0], [0], [1], [0, 0, 1, 1], [], []>} : vector<4x32xf32>, vector<32x256xf32>, vector<4x256xf32> -> vector<4x256xf32>
    %31 = vector.broadcast %11 : vector<4x1xf32> to vector<4x256xf32>
    %32 = arith.addf %30, %31 : vector<4x256xf32>
    %33 = vector.extract_strided_slice %8 {offsets = [4, 0], sizes = [4, 256], strides = [1, 1]} : vector<8x256xf32> to vector<4x256xf32>
    %34 = arith.addf %32, %33 : vector<4x256xf32>
    %35 = arith.mulf %34, %34 : vector<4x256xf32>
    %36 = arith.addf %23, %35 : vector<4x256xf32>
    %37 = vector.shape_cast %36 : vector<4x256xf32> to vector<1x4x256xf32>
    %cst_19 = arith.constant dense<0.000000e+00> : vector<1xf32>
    %38 = vector.multi_reduction <add>, %37, %cst_19 [1, 2] : vector<1x4x256xf32> to vector<1xf32>
    %39 = vector.shape_cast %38 : vector<1xf32> to vector<1x1x1xf32>
    %40 = vector.extract %39[0, 0, 0] : f32 from vector<1x1x1xf32>
    %cst_20 = arith.constant 4.8828125E-4 : f32
    %41 = arith.mulf %40, %cst_20 : f32
    %c0_21 = arith.constant 0 : index
    %c0_22 = arith.constant 0 : index
    %42 = memref.load %arg8[%c0_21, %c0_22] : memref<1x1xf32, #tpu.memory_space<smem>>
    memref.store %41, %arg8[%c0_21, %c0_22] : memref<1x1xf32, #tpu.memory_space<smem>>
    return
  }
}

</mosaic_0001>

<bundles_post_ra>
// kernel: diffusion_forward_loss.1
= control target key start
LH: loop header
LB: loop body
LE: loop exit
PB: predicated region body
PF: predicated region fallthrough
CT: control target
= control target key end

     0   :  { %s650_s0 = inlined_call_operand.vmem [shape: f32[8,256], index: 0, kind: input, shape index: {}]   ;;  %s651_s1 = inlined_call_operand.vmem [shape: f32[8,256], index: 1, kind: input, shape index: {}]   ;;  %s652_s2 = inlined_call_operand.vmem [shape: f32[8,1], index: 2, kind: input, shape index: {}]   ;;  %s653_s3 = inlined_call_operand.vmem [shape: f32[8,1], index: 3, kind: input, shape index: {}]   ;;  %s654_s4 = inlined_call_operand.vmem [shape: f32[32,2], index: 4, kind: input, shape index: {}]   ;;  %s655_s5 = inlined_call_operand.vmem [shape: f32[32,4], index: 5, kind: input, shape index: {}]   ;;  %s656_s6 = inlined_call_operand.vmem [shape: f32[4,32], index: 6, kind: input, shape index: {}]   ;;  %s657_s7 = inlined_call_operand.vmem [shape: f32[4,1], index: 7, kind: input, shape index: {}]   ;;  %s658_s8 = inlined_call_operand.hbm [shape: f32[1,1], index: 8, kind: output, shape index: {}]  }
   0x1   :  { %v34_v0 = vld [vmem:[%s652_s2] sm:$0xff] }
   0x2   :  { %13 = vsyncpa [#allocation3], 0  ;;  %v474_v1 = vmov 0   ;;  %v61_v2 = vld [vmem:[%s654_s4 + $0x18] sm:$0xff]  ;;  %v60_v3 = vld [vmem:[%s654_s4 + $0x10] sm:$0xff]  ;;  %vm95_vm0 = vcmask 1043456  }
   0x3   :  { %420 = vset.pattern.permute.xlu0 %v474_v1  ;;  %421 = vset.pattern.permute.xlu1 %v474_v1  ;;  %v59_v4 = vld [vmem:[%s654_s4 + $0x8] sm:$0xff]  ;;  %v540_v5 = vld [vmem:[%s651_s1] sm:$0xff]  ;;  %vm82_vm1 = vcmask 31744   ;;  %v587_v17 = vld [vmem:[%s655_s5 + $0x10] sm:$0xff]  ;;  %v475_v23 = vmov 1   ;;  %vm173_vm2 = vcmask 261120  }
   0x4   :  { %37 = vperm.xlu0 %420, %v34_v0   ;;  %422 = vset.pattern.permute.xlu2 %v474_v1  ;;  %v545_v6 = vld [vmem:[%s651_s1 + $0x8] sm:$0xff]  ;;  %v58_v7 = vld [vmem:[%s654_s4] sm:$0xff]  ;;  %v596_v18 = vld [vmem:[%s655_s5 + $0x18] sm:$0xff]  ;;  %s381_s9 = sshll.u32 %s658_s8, 4  ;;  %s476_s11 = smov [#allocation2]   ;;  %s382_s9 = int_to_ptr.hbm [resolvable:$true] %s381_s9 }
   0x5   :  { %74 = vperm.xlu1 %421, %v60_v3   ;;  %64 = vperm.xlu2 %422, %v58_v7   ;;  %v32_v9 = vld [vmem:[%s650_s0] sm:$0xff]  ;;  %v33_v10 = vld [vmem:[%s650_s0 + $0x8] sm:$0xff] }
   0x6   :  { %v565_v15 = vld [vmem:[%s655_s5] sm:$0xff]  ;;  %v578_v16 = vld [vmem:[%s655_s5 + $0x8] sm:$0xff] }
   0x7   :  { %v44_v36 = vld [vmem:[%s653_s3] sm:$0xff] }
   0x8   :  { %v610_v47 = vld [vmem:[%s656_s6] sm:$0xf] }
   0x9   :  { %v57_v52 = vld [vmem:[%s657_s7] sm:$0xf] }
   0xc   :  { %79 = vperm.xlu0 %420, %v61_v2  }
   0xd   :  { %69 = vperm.xlu1 %421, %v59_v4   ;;  %423 = vset.pattern.permute.xlu2 %v475_v23 }
   0xe   :  { %234 = vperm.xlu2 %423, %v61_v2  }
  0x14   :  { %424 = vset.pattern.permute.xlu0 %v475_v23 }
  0x15   :  { %425 = vset.pattern.permute.xlu1 %v475_v23  ;;  %230 = vperm.xlu0 %424, %v60_v3  }
  0x16   :  { %226 = vperm.xlu1 %425, %v59_v4   ;;  %222 = vperm.xlu2 %423, %v58_v7  }
  0x1e   :  { %426 = vset.pattern.permute.xlu1 %v474_v1  ;;  %427 = vset.pattern.permute.xlu2 %v474_v1 }
  0x1f   :  { %47 = vperm.xlu1 %426, %v44_v36   ;;  %170 = vperm.xlu2 %427, %v57_v52  }
  0x5f   :  { %v65_v34 = vpop.permute.xlu2 %64 }
  0x68   :  { %v235_v61 = vpop.permute.xlu2 %234 }
  0x76   :  { %v38_v8 = vpop.permute.xlu0 %37 }
  0x77   :  { %v40_v11 = vmul.f32 %v38_v8, %v540_v5  ;;  %v41_v12 = vmul.f32 %v38_v8, %v545_v6  ;;  %v75_v24 = vpop.permute.xlu1 %74 }
  0x79   :  { %v558_v13 = vadd.f32 %v40_v11, %v32_v9  ;;  %v560_v14 = vadd.f32 %v41_v12, %v33_v10  ;;  %v223_v9 = vpop.permute.xlu2 %222 }
  0x7b   :  { %391 = vmatpush.msk.msra.mxu0 %vm95_vm0, %v558_v13  ;;  %396 = vmatpush.msk.msra.mxu1 %vm95_vm0, %v560_v14  ;;  %v237_v50 = vrot.slane %v558_v13, 4  ;;  %v238_v51 = vrot.slane %v560_v14, 4 }
  0x7c   :  { %392 = vmatmul.msk.f32.vlgmr.msra.gmra.mxu0 %vm82_vm1, %v565_v15  ;;  %397 = vmatmul.msk.f32.vlgmr.msra.gmra.mxu1 %vm82_vm1, %v565_v15 }
  0x7e   :  { %v80_v27 = vpop.permute.xlu0 %79 }
  0x7f   :  { %v70_v28 = vpop.permute.xlu1 %69 }
  0x84   :  { %393 = vmatmul.msk.f32.gmra.mxu0 %vm82_vm1, %v578_v16  ;;  %398 = vmatmul.msk.f32.gmra.mxu1 %vm82_vm1, %v578_v16 }
  0x87   :  { %v231_v62 = vpop.permute.xlu0 %230 }
  0x88   :  { %v227_v3 = vpop.permute.xlu1 %226 }
  0x8c   :  { %394 = vmatmul.msk.f32.gmra.mxu0 %vm82_vm1, %v587_v17  ;;  %399 = vmatmul.msk.f32.gmra.mxu1 %vm82_vm1, %v587_v17 }
  0x94   :  { %395 = vmatmul.msk.f32.gmra.mxu0 %vm82_vm1, %v596_v18  ;;  %400 = vmatmul.msk.f32.gmra.mxu1 %vm82_vm1, %v596_v18 }
  0xf9   :  { %v119_v19 = vpop.f32.mrf.mxu0  ;;  %v148_v20 = vpop.f32.mrf.mxu1 }
  0xfa   :  { %v120_v39 = vadd.f32 %v119_v19, %v65_v34  ;;  %v149_v40 = vadd.f32 %v148_v20, %v65_v34 }
 0x101   :  { %v122_v21 = vpop.f32.mrf.mxu0  ;;  %v151_v22 = vpop.f32.mrf.mxu1 }
 0x102   :  { %v123_v37 = vadd.f32 %v122_v21, %v70_v28  ;;  %v152_v38 = vadd.f32 %v151_v22, %v70_v28  ;;  %v171_v21 = vpop.permute.xlu2 %170  ;;  %v48_v22 = vpop.permute.xlu1 %47 }
 0x103   :  { %v50_v23 = vmul.f32 %v48_v22, %v540_v5 }
 0x109   :  { %v125_v25 = vpop.f32.mrf.mxu0  ;;  %v154_v26 = vpop.f32.mrf.mxu1 }
 0x10a   :  { %v126_v31 = vadd.f32 %v125_v25, %v75_v24  ;;  %v155_v35 = vadd.f32 %v154_v26, %v75_v24  ;;  %v51_v25 = vmul.f32 %v48_v22, %v545_v6 }
 0x10c   :  { %v352_v28 = vrot.slane %v51_v25, 4 }
 0x111   :  { %v128_v29 = vpop.f32.mrf.mxu0  ;;  %v157_v30 = vpop.f32.mrf.mxu1 }
 0x112   :  { %v129_v32 = vadd.f32 %v128_v29, %v80_v27  ;;  %v158_v33 = vadd.f32 %v157_v30, %v80_v27  ;;  %v351_v27 = vrot.slane %v50_v23, 4 }
 0x114   :  { %428 = vtanh.f32 %v129_v32 }
 0x115   :  { %430 = vtanh.f32 %v158_v33 }
 0x116   :  { %432 = vtanh.f32 %v126_v31 }
 0x117   :  { %434 = vtanh.f32 %v155_v35 }
 0x118   :  { %436 = vtanh.f32 %v123_v37 }
 0x119   :  { %438 = vtanh.f32 %v152_v38 }
 0x11a   :  { %v429_v41 = vpop.eup %428  ;;  %440 = vtanh.f32 %v120_v39 }
 0x11b   :  { %v431_v42 = vpop.eup %430  ;;  %442 = vtanh.f32 %v149_v40  ;;  %189 = vmatpush.msra.mxu2 %v429_v41 }
 0x11c   :  { %v433_v43 = vpop.eup %432  ;;  %209 = vmatpush.msra.mxu3 %v431_v42 }
 0x11d   :  { %v435_v44 = vpop.eup %434  ;;  %190 = vmatpush.msra.mxu2 %v433_v43 }
 0x11e   :  { %v437_v45 = vpop.eup %436  ;;  %210 = vmatpush.msra.mxu3 %v435_v44 }
 0x11f   :  { %v439_v46 = vpop.eup %438  ;;  %191 = vmatpush.msra.mxu2 %v437_v45 }
 0x120   :  { %v441_v48 = vpop.eup %440  ;;  %211 = vmatpush.msra.mxu3 %v439_v46 }
 0x121   :  { %v443_v49 = vpop.eup %442  ;;  %192 = vmatpush.msra.mxu2 %v441_v48 }
 0x122   :  { %212 = vmatpush.msra.mxu3 %v443_v49  ;;  %401 = vmatmul.msk.f32.vlgmr.msra.gmra.mxu2 %vm173_vm2, %v610_v47 }
 0x123   :  { %402 = vmatmul.msk.f32.vlgmr.msra.gmra.mxu3 %vm173_vm2, %v610_v47  ;;  %403 = vmatpush.msk.msrb.mxu2 %vm95_vm0, %v237_v50 }
 0x124   :  { %408 = vmatpush.msk.msrb.mxu3 %vm95_vm0, %v238_v51 }
 0x12a   :  { %404 = vmatmul.msk.f32.vlgmr.msrb.gmra.mxu2 %vm82_vm1, %v565_v15 }
 0x12b   :  { %409 = vmatmul.msk.f32.vlgmr.msrb.gmra.mxu3 %vm82_vm1, %v565_v15 }
 0x132   :  { %405 = vmatmul.msk.f32.gmra.mxu2 %vm82_vm1, %v578_v16 }
 0x133   :  { %410 = vmatmul.msk.f32.gmra.mxu3 %vm82_vm1, %v578_v16 }
 0x13a   :  { %406 = vmatmul.msk.f32.gmra.mxu2 %vm82_vm1, %v587_v17 }
 0x13b   :  { %411 = vmatmul.msk.f32.gmra.mxu3 %vm82_vm1, %v587_v17 }
 0x142   :  { %407 = vmatmul.msk.f32.gmra.mxu2 %vm82_vm1, %v596_v18 }
 0x143   :  { %412 = vmatmul.msk.f32.gmra.mxu3 %vm82_vm1, %v596_v18 }
 0x1a5   :  { %v194_v53 = vpop.f32.mrf.mxu2 }
 0x1a6   :  { %v214_v54 = vpop.f32.mrf.mxu3  ;;  %v195_v24 = vadd.f32 %v194_v53, %v171_v21 }
 0x1a7   :  { %v215_v26 = vadd.f32 %v214_v54, %v171_v21 }
 0x1a8   :  { %v217_v30 = vadd.f32 %v195_v24, %v50_v23 }
 0x1a9   :  { %v218_v33 = vadd.f32 %v215_v26, %v51_v25 }
 0x1aa   :  { %v219_v37 = vmul.f32 %v217_v30, %v217_v30 }
 0x1ab   :  { %v220_v39 = vmul.f32 %v218_v33, %v218_v33 }
 0x1ad   :  { %v260_v55 = vpop.f32.mrf.mxu2 }
 0x1ae   :  { %v289_v56 = vpop.f32.mrf.mxu3  ;;  %v261_v11 = vadd.f32 %v260_v55, %v223_v9 }
 0x1af   :  { %v290_v12 = vadd.f32 %v289_v56, %v223_v9 }
 0x1b5   :  { %v263_v57 = vpop.f32.mrf.mxu2 }
 0x1b6   :  { %v292_v58 = vpop.f32.mrf.mxu3  ;;  %v264_v8 = vadd.f32 %v263_v57, %v227_v3 }
 0x1b7   :  { %v293_v10 = vadd.f32 %v292_v58, %v227_v3 }
 0x1bd   :  { %v266_v59 = vpop.f32.mrf.mxu2 }
 0x1be   :  { %v295_v60 = vpop.f32.mrf.mxu3  ;;  %v267_v0 = vadd.f32 %v266_v59, %v231_v62 }
 0x1bf   :  { %v296_v4 = vadd.f32 %v295_v60, %v231_v62 }
 0x1c5   :  { %v269_v63 = vpop.f32.mrf.mxu2 }
 0x1c6   :  { %v270_v1 = vadd.f32 %v269_v63, %v235_v61  ;;  %v298_v2 = vpop.f32.mrf.mxu3 }
 0x1c7   :  { %v299_v7 = vadd.f32 %v298_v2, %v235_v61 }
 0x1c8   :  { %444 = vtanh.f32 %v270_v1 }
 0x1c9   :  { %446 = vtanh.f32 %v299_v7 }
 0x1ca   :  { %448 = vtanh.f32 %v267_v0 }
 0x1cb   :  { %450 = vtanh.f32 %v296_v4 }
 0x1cc   :  { %452 = vtanh.f32 %v264_v8 }
 0x1cd   :  { %454 = vtanh.f32 %v293_v10 }
 0x1ce   :  { %v445_v13 = vpop.eup %444  ;;  %456 = vtanh.f32 %v261_v11 }
 0x1cf   :  { %v447_v14 = vpop.eup %446  ;;  %458 = vtanh.f32 %v290_v12  ;;  %321 = vmatpush.msrb.mxu0 %v445_v13 }
 0x1d0   :  { %v449_v15 = vpop.eup %448  ;;  %341 = vmatpush.msrb.mxu1 %v447_v14 }
 0x1d1   :  { %v451_v16 = vpop.eup %450  ;;  %322 = vmatpush.msrb.mxu0 %v449_v15 }
 0x1d2   :  { %v453_v17 = vpop.eup %452  ;;  %342 = vmatpush.msrb.mxu1 %v451_v16 }
 0x1d3   :  { %v455_v18 = vpop.eup %454  ;;  %323 = vmatpush.msrb.mxu0 %v453_v17 }
 0x1d4   :  { %v457_v19 = vpop.eup %456  ;;  %343 = vmatpush.msrb.mxu1 %v455_v18 }
 0x1d5   :  { %v459_v20 = vpop.eup %458  ;;  %324 = vmatpush.msrb.mxu0 %v457_v19 }
 0x1d6   :  { %344 = vmatpush.msrb.mxu1 %v459_v20  ;;  %413 = vmatmul.msk.f32.vlgmr.msrb.gmra.mxu0 %vm173_vm2, %v610_v47 }
 0x1d7   :  { %414 = vmatmul.msk.f32.vlgmr.msrb.gmra.mxu1 %vm173_vm2, %v610_v47 }
 0x253   :  { %v326_v29 = vpop.f32.mrf.mxu0 }
 0x254   :  { %v327_v31 = vadd.f32 %v326_v29, %v171_v21  ;;  %v346_v32 = vpop.f32.mrf.mxu1 }
 0x255   :  { %v347_v34 = vadd.f32 %v346_v32, %v171_v21 }
 0x256   :  { %v355_v35 = vadd.f32 %v351_v27, %v327_v31 }
 0x257   :  { %v356_v36 = vadd.f32 %v352_v28, %v347_v34 }
 0x258   :  { %v357_v38 = vmul.f32 %v355_v35, %v355_v35 }
 0x259   :  { %v358_v40 = vmul.f32 %v356_v36, %v356_v36 }
 0x25a   :  { %v359_v41 = vadd.f32 %v357_v38, %v219_v37 }
 0x25b   :  { %v360_v5 = vadd.f32 %v358_v40, %v220_v39 }
 0x25c   :  { %v361_v42 = vsel %vm95_vm0, %v359_v41, 0.0 }
 0x25d   :  { %v362_v6 = vsel %vm95_vm0, %v360_v5, 0.0 }
 0x25e   :  { %v363_v43 = vadd.f32 %v362_v6, %v361_v42 }
 0x260   :  { %364 = vadd.xlane.f32.xlu0 %v363_v43 }
 0x2d3   :  { %v365_v44 = vpop.xlane.xlu0 %364 }
 0x2d4   :  { %v366_v45 = vrot.slane %v365_v44, 4 }
 0x2d6   :  { %v367_v46 = vadd.f32 %v366_v45, %v365_v44 }
 0x2d8   :  { %v368_v47 = vrot.slane %v367_v46, 2 }
 0x2da   :  { %v369_v48 = vadd.f32 %v368_v47, %v367_v46 }
 0x2dc   :  { %v370_v49 = vrot.slane %v369_v48, 1 }
 0x2de   :  { %v371_v50 = vadd.f32 %v370_v49, %v369_v48 }
 0x2e0   :  { %415 = vpush %v371_v50 }
 0x311   :  { %s416_s10 = spop %415 }
 0x312   :  { %s373_s2 = smul.f32 0.00048828125, %s416_s10 }
 0x314   :  { %375 = sst [smem:[#allocation2]] %s373_s2 }
 0x315   :  { %384 = dma.smem_to_hbm %s476_s11, 16, %s382_s9, [#allocation3]  }
 0x316   :  { %472 = dma.done.wait [#allocation3], 16  }
 0x317   :  { %473 = vsyncadd [#allocation3], 4294967280 }
 0x318   :  { %389 = sfence }
 0x319   :  { %390 = vsyncpa [#allocation3], 1 }

</bundles_post_ra>
